<compile_context>
chip_gen: v7x
topology: tpu7x:2x2x1
jax: 0.10.0
libtpu: 0.0.40
codegen_flags: <defaults>
</compile_context>

<pallas_src>
import jax
import jax.numpy as jnp
from jax.experimental import pallas as pl
from jax.experimental.pallas import tpu as pltpu


# ------------------------------------------------------------------ kernel ---
def lula_mlp_kernel(x_ref, w1_ref, b1_ref, w2_ref, b2_ref, w3_ref, b3_ref, o_ref):
    # Feature-major layout: x_ref (F_in, T), weights (out, in), biases (out, 1),
    # output (n_out_pad, T).  bf16 MXU operands, f32 accumulation / bias / ReLU.
    x = x_ref[...].astype(jnp.bfloat16)                               # (16, T)
    h1 = jnp.dot(w1_ref[...], x, preferred_element_type=jnp.float32) + b1_ref[...]
    h1 = jnp.maximum(h1, 0.0).astype(jnp.bfloat16)                    # (40, T)
    h2 = jnp.dot(w2_ref[...], h1, preferred_element_type=jnp.float32) + b2_ref[...]
    h2 = jnp.maximum(h2, 0.0).astype(jnp.bfloat16)                    # (40, T)
    out = jnp.dot(w3_ref[...], h2, preferred_element_type=jnp.float32) + b3_ref[...]
    o_ref[...] = out.astype(o_ref.dtype)                              # (16, T) bf16


# ------------------------------------------------- one-time parameter prep ---
def prepare_params(params):
    """Hoisted out of the forward: transpose to (out, in), pad the classifier
    to a multiple of 8 sublanes (10 -> 16), cast weights to bf16 / biases to
    f32 column vectors.  Called once; results reused by every forward call."""
    (w1, b1), (w2, b2), (w3, b3) = params
    n_out = w3.shape[1]
    n_out_p = max(8, ((n_out + 7) // 8) * 8)                          # 10 -> 16
    w3p = jnp.zeros((w3.shape[0], n_out_p), w3.dtype).at[:, :n_out].set(w3)
    b3p = jnp.zeros((n_out_p,), b3.dtype).at[:n_out].set(b3.reshape(-1))

    w1t = jnp.asarray(w1.T, jnp.bfloat16)                             # (40, 16)
    w2t = jnp.asarray(w2.T, jnp.bfloat16)                             # (40, 40)
    w3t = jnp.asarray(w3p.T, jnp.bfloat16)                            # (16, 40)
    b1c = jnp.asarray(b1.reshape(-1, 1), jnp.float32)                 # (40, 1)
    b2c = jnp.asarray(b2.reshape(-1, 1), jnp.float32)                 # (40, 1)
    b3c = jnp.asarray(b3p.reshape(-1, 1), jnp.float32)                # (16, 1)
    return (w1t, b1c, w2t, b2c, w3t, b3c), n_out


# ----------------------------------------------------------------- wrapper ---
def lula_forward(x, prepped, *, batch_tile=1024):
    (w1t, b1c, w2t, b2c, w3t, b3c), n_out = prepped
    B, F_in = x.shape
    n_out_p = w3t.shape[0]

    # Batch on the lane axis: pad B to a multiple of 128 and pick a 128-aligned
    # tile; whenever >= 2 lane-blocks exist, force >= 2 grid steps so the
    # "parallel" axis can be sharded across v7x's two TensorCores.
    B128 = ((max(B, 1) + 127) // 128) * 128
    n_blk = B128 // 128
    max_blk = max(1, batch_tile // 128)
    blk = 1 if n_blk <= 1 else min(max_blk, max(1, n_blk // 2))
    tile = blk * 128
    Bp = ((B128 + tile - 1) // tile) * tile
    grid = (Bp // tile,)

    # Single fused transpose+pad (under jit); x stays f32, cast in-kernel.
    xt = jnp.zeros((F_in, Bp), jnp.float32).at[:, :B].set(x.T)

    def const_spec(a):
        # tiny array resident in VMEM, same block every grid step
        return pl.BlockSpec(a.shape, lambda i: (0,) * a.ndim)

    out = pl.pallas_call(
        lula_mlp_kernel,
        out_shape=jax.ShapeDtypeStruct((n_out_p, Bp), jnp.bfloat16),
        grid_spec=pl.GridSpec(
            grid=grid,
            in_specs=[
                pl.BlockSpec((F_in, tile), lambda i: (0, i)),
                const_spec(w1t), const_spec(b1c),
                const_spec(w2t), const_spec(b2c),
                const_spec(w3t), const_spec(b3c),
            ],
            out_specs=pl.BlockSpec((n_out_p, tile), lambda i: (0, i)),
        ),
        compiler_params=pltpu.CompilerParams(
            dimension_semantics=("parallel",),
        ),
    )(xt, w1t, b1c, w2t, b2c, w3t, b3c)

    # back to (batch, classes); padded rows/cols discarded
    return out[:n_out, :B].T


# -------------------------------------------------------- parameter set-up ---
def make_params(key):
    """Deterministic synthetic parameters for the augmented (LULA) classifier.

    Base clf dims:  16 -> 32 -> 32 -> 10,  n_lula_units = [8, 8]
    Augmented:      16 -> 40 -> 40 -> 10
    LULA structure: the block W[lula_in_cols -> base_out_rows] of hidden
    layer 2 is zero, so base-unit activations are unaffected by lula units
    (the grad mask in the PyTorch module keeps it that way during training).
    Weights are stored as (in_features, out_features) so the reference computes
    y = x @ W + b  ==  torch.nn.functional.linear(x, W.T, b).
    """
    d_in, h, n_cls, n_lula = 16, 32, 10, 8
    ks = jax.random.split(key, 12)

    def u(k, shape, fan_in):
        bound = 1.0 / jnp.sqrt(fan_in)
        return jax.random.uniform(k, shape, jnp.float32, -bound, bound)

    # Layer 1: Linear(16, 32) augmented to (16, 40)   [m_in=0, m_out=8]
    w1_base = u(ks[0], (d_in, h), d_in)
    w1_lula = u(ks[1], (d_in, n_lula), d_in)
    w1 = jnp.concatenate([w1_base, w1_lula], axis=1)                  # (16, 40)
    b1 = jnp.concatenate([u(ks[2], (h,), d_in), u(ks[3], (n_lula,), d_in)])[None, :]

    # Layer 2: Linear(32, 32) augmented to (40, 40)   [m_in=8, m_out=8]
    w2_bb = u(ks[4], (h, h), h)                  # base-in  -> base-out
    w2_bl = u(ks[5], (h, n_lula), h)             # base-in  -> lula-out
    w2_lb = jnp.zeros((n_lula, h), jnp.float32)  # lula-in  -> base-out (masked 0)
    w2_ll = u(ks[6], (n_lula, n_lula), h)        # lula-in  -> lula-out
    w2 = jnp.concatenate(
        [jnp.concatenate([w2_bb, w2_bl], axis=1),
         jnp.concatenate([w2_lb, w2_ll], axis=1)], axis=0)            # (40, 40)
    b2 = jnp.concatenate([u(ks[7], (h,), h), u(ks[8], (n_lula,), h)])[None, :]

    # clf: Linear(32, 10) augmented to (40, 10)       [m_in=8, m_out=0]
    w3_base = u(ks[9], (h, n_cls), h)
    w3_lula = u(ks[10], (n_lula, n_cls), h)
    w3 = jnp.concatenate([w3_base, w3_lula], axis=0)                  # (40, 10)
    b3 = u(ks[11], (n_cls,), h)[None, :]

    return ((w1, b1), (w2, b2), (w3, b3))


def reference_forward(x, params):
    (w1, b1), (w2, b2), (w3, b3) = params
    h1 = jnp.maximum(x @ w1 + b1, 0.0)
    h2 = jnp.maximum(h1 @ w2 + b2, 0.0)
    return h2 @ w3 + b3


# -------------------------------------------------------------------- main ---
if __name__ == "__main__":
    key = jax.random.PRNGKey(0)
    k_x, k_p = jax.random.split(key)

    batch, d_in = 16, 16
    x = jax.random.normal(k_x, (batch, d_in), jnp.float32)
    params = make_params(k_p)

    prepped = prepare_params(params)                     # one-time param prep
    fwd = jax.jit(lambda xx: lula_forward(xx, prepped))  # fuses transpose/pad

    out = fwd(x)                                         # B=16 -> grid=(1,)
    out = jax.block_until_ready(out)

    ref = reference_forward(x, params)                   # f32 reference
    assert out.shape == (batch, 10)
    # bf16 matmul operands + bf16 output -> loosened tolerance vs f32 reference.
    assert jnp.allclose(out.astype(jnp.float32), ref, atol=5e-2, rtol=5e-2), \
        "mismatch vs JAX reference"

    print("KERNEL_OK")
</pallas_src>

<mosaic_0001>
module attributes {stable_mosaic.version = 11 : i64} {
  func.func @lula_mlp_kernel(%arg0: i32, %arg1: memref<16x128xf32, #tpu.memory_space<vmem>>, %arg2: memref<40x16xbf16, #tpu.memory_space<vmem>>, %arg3: memref<40x1xf32, #tpu.memory_space<vmem>>, %arg4: memref<40x40xbf16, #tpu.memory_space<vmem>>, %arg5: memref<40x1xf32, #tpu.memory_space<vmem>>, %arg6: memref<16x40xbf16, #tpu.memory_space<vmem>>, %arg7: memref<16x1xf32, #tpu.memory_space<vmem>>, %arg8: memref<16x128xbf16, #tpu.memory_space<vmem>>) attributes {dimension_semantics = [#tpu.dimension_semantics<parallel>], iteration_bounds = array<i64: 1>, scalar_prefetch = 0 : i64, scratch_operands = 0 : i64, tpu.core_type = #tpu.core_type<tc>, window_params = [{transform_indices = @transform_0, window_bounds = array<i64: 16, 128>}, {pipeline_mode = #tpu.pipeline_mode<synchronous>, transform_indices = @transform_1, window_bounds = array<i64: 40, 16>}, {pipeline_mode = #tpu.pipeline_mode<synchronous>, transform_indices = @transform_2, window_bounds = array<i64: 40, 1>}, {pipeline_mode = #tpu.pipeline_mode<synchronous>, transform_indices = @transform_3, window_bounds = array<i64: 40, 40>}, {pipeline_mode = #tpu.pipeline_mode<synchronous>, transform_indices = @transform_4, window_bounds = array<i64: 40, 1>}, {pipeline_mode = #tpu.pipeline_mode<synchronous>, transform_indices = @transform_5, window_bounds = array<i64: 16, 40>}, {pipeline_mode = #tpu.pipeline_mode<synchronous>, transform_indices = @transform_6, window_bounds = array<i64: 16, 1>}, {transform_indices = @transform_7, window_bounds = array<i64: 16, 128>}]} {
    %c0 = arith.constant 0 : index
    %c0_0 = arith.constant 0 : index
    %0 = vector.load %arg1[%c0, %c0_0] : memref<16x128xf32, #tpu.memory_space<vmem>>, vector<16x128xf32>
    %1 = arith.truncf %0 : vector<16x128xf32> to vector<16x128xbf16>
    %c0_1 = arith.constant 0 : index
    %c0_2 = arith.constant 0 : index
    %2 = vector.load %arg2[%c0_1, %c0_2] : memref<40x16xbf16, #tpu.memory_space<vmem>>, vector<40x16xbf16>
    %cst = arith.constant dense<0.000000e+00> : vector<40x128xf32>
    %3 = tpu.matmul %2, %1, %cst {dimension_numbers = #tpu.dot_dimension_numbers<[1], [0], [0], [1], [0, 0, 1, 1], [], []>} : vector<40x16xbf16>, vector<16x128xbf16>, vector<40x128xf32> -> vector<40x128xf32>
    %c0_3 = arith.constant 0 : index
    %c0_4 = arith.constant 0 : index
    %4 = vector.load %arg3[%c0_3, %c0_4] : memref<40x1xf32, #tpu.memory_space<vmem>>, vector<40x1xf32>
    %5 = vector.broadcast %4 : vector<40x1xf32> to vector<40x128xf32>
    %6 = arith.addf %3, %5 : vector<40x128xf32>
    %cst_5 = arith.constant 0.000000e+00 : f32
    %7 = vector.broadcast %cst_5 : f32 to vector<40x128xf32>
    %8 = arith.maximumf %6, %7 : vector<40x128xf32>
    %9 = arith.truncf %8 : vector<40x128xf32> to vector<40x128xbf16>
    %c0_6 = arith.constant 0 : index
    %c0_7 = arith.constant 0 : index
    %10 = vector.load %arg4[%c0_6, %c0_7] : memref<40x40xbf16, #tpu.memory_space<vmem>>, vector<40x40xbf16>
    %cst_8 = arith.constant dense<0.000000e+00> : vector<40x128xf32>
    %11 = tpu.matmul %10, %9, %cst_8 {dimension_numbers = #tpu.dot_dimension_numbers<[1], [0], [0], [1], [0, 0, 1, 1], [], []>} : vector<40x40xbf16>, vector<40x128xbf16>, vector<40x128xf32> -> vector<40x128xf32>
    %c0_9 = arith.constant 0 : index
    %c0_10 = arith.constant 0 : index
    %12 = vector.load %arg5[%c0_9, %c0_10] : memref<40x1xf32, #tpu.memory_space<vmem>>, vector<40x1xf32>
    %13 = vector.broadcast %12 : vector<40x1xf32> to vector<40x128xf32>
    %14 = arith.addf %11, %13 : vector<40x128xf32>
    %cst_11 = arith.constant 0.000000e+00 : f32
    %15 = vector.broadcast %cst_11 : f32 to vector<40x128xf32>
    %16 = arith.maximumf %14, %15 : vector<40x128xf32>
    %17 = arith.truncf %16 : vector<40x128xf32> to vector<40x128xbf16>
    %c0_12 = arith.constant 0 : index
    %c0_13 = arith.constant 0 : index
    %18 = vector.load %arg6[%c0_12, %c0_13] : memref<16x40xbf16, #tpu.memory_space<vmem>>, vector<16x40xbf16>
    %cst_14 = arith.constant dense<0.000000e+00> : vector<16x128xf32>
    %19 = tpu.matmul %18, %17, %cst_14 {dimension_numbers = #tpu.dot_dimension_numbers<[1], [0], [0], [1], [0, 0, 1, 1], [], []>} : vector<16x40xbf16>, vector<40x128xbf16>, vector<16x128xf32> -> vector<16x128xf32>
    %c0_15 = arith.constant 0 : index
    %c0_16 = arith.constant 0 : index
    %20 = vector.load %arg7[%c0_15, %c0_16] : memref<16x1xf32, #tpu.memory_space<vmem>>, vector<16x1xf32>
    %21 = vector.broadcast %20 : vector<16x1xf32> to vector<16x128xf32>
    %22 = arith.addf %19, %21 : vector<16x128xf32>
    %23 = arith.truncf %22 : vector<16x128xf32> to vector<16x128xbf16>
    %c0_17 = arith.constant 0 : index
    %c0_18 = arith.constant 0 : index
    %24 = vector.load %arg8[%c0_17, %c0_18] : memref<16x128xbf16, #tpu.memory_space<vmem>>, vector<16x128xbf16>
    tpu.vector_store %arg8[%c0_17, %c0_18], %23 {strides = array<i32>} : memref<16x128xbf16, #tpu.memory_space<vmem>>, vector<16x128xbf16>,
    return
  }
  func.func @transform_0(%arg0: i32) -> (i32, i32) {
    %c0_i32 = arith.constant 0 : i32
    %c0_i32_0 = arith.constant 0 : i32
    return %c0_i32, %arg0 : i32, i32
  }
  func.func @transform_1(%arg0: i32) -> (i32, i32) {
    %c0_i32 = arith.constant 0 : i32
    %c0_i32_0 = arith.constant 0 : i32
    %c0_i32_1 = arith.constant 0 : i32
    return %c0_i32, %c0_i32_0 : i32, i32
  }
  func.func @transform_2(%arg0: i32) -> (i32, i32) {
    %c0_i32 = arith.constant 0 : i32
    %c0_i32_0 = arith.constant 0 : i32
    %c0_i32_1 = arith.constant 0 : i32
    return %c0_i32, %c0_i32_0 : i32, i32
  }
  func.func @transform_3(%arg0: i32) -> (i32, i32) {
    %c0_i32 = arith.constant 0 : i32
    %c0_i32_0 = arith.constant 0 : i32
    %c0_i32_1 = arith.constant 0 : i32
    return %c0_i32, %c0_i32_0 : i32, i32
  }
  func.func @transform_4(%arg0: i32) -> (i32, i32) {
    %c0_i32 = arith.constant 0 : i32
    %c0_i32_0 = arith.constant 0 : i32
    %c0_i32_1 = arith.constant 0 : i32
    return %c0_i32, %c0_i32_0 : i32, i32
  }
  func.func @transform_5(%arg0: i32) -> (i32, i32) {
    %c0_i32 = arith.constant 0 : i32
    %c0_i32_0 = arith.constant 0 : i32
    %c0_i32_1 = arith.constant 0 : i32
    return %c0_i32, %c0_i32_0 : i32, i32
  }
  func.func @transform_6(%arg0: i32) -> (i32, i32) {
    %c0_i32 = arith.constant 0 : i32
    %c0_i32_0 = arith.constant 0 : i32
    %c0_i32_1 = arith.constant 0 : i32
    return %c0_i32, %c0_i32_0 : i32, i32
  }
  func.func @transform_7(%arg0: i32) -> (i32, i32) {
    %c0_i32 = arith.constant 0 : i32
    %c0_i32_0 = arith.constant 0 : i32
    return %c0_i32, %arg0 : i32, i32
  }
}

</mosaic_0001>

<bundles_post_ra>
// kernel: _lambda_.1
= control target key start
LH: loop header
LB: loop body
LE: loop exit
PB: predicated region body
PF: predicated region fallthrough
CT: control target
= control target key end

     0   :  { %12 = vsyncpa [#allocation3], 0  ;;  %s491_s24 = smov [#allocation2]   ;;  %s636_s0 = inlined_call_operand.vmem [shape: f32[16,128], index: 0, kind: input, shape index: {}]   ;;  %s637_s1 = inlined_call_operand.hbm [shape: bf16[40,16], index: 1, kind: input, shape index: {}]   ;;  %s638_s2 = inlined_call_operand.vmem [shape: f32[40,1], index: 2, kind: input, shape index: {}]   ;;  %s639_s3 = inlined_call_operand.vmem [shape: bf16[40,40], index: 3, kind: input, shape index: {}]   ;;  %s640_s4 = inlined_call_operand.vmem [shape: f32[40,1], index: 4, kind: input, shape index: {}]   ;;  %s641_s5 = inlined_call_operand.vmem [shape: bf16[16,40], index: 5, kind: input, shape index: {}]   ;;  %s642_s6 = inlined_call_operand.vmem [shape: f32[16,1], index: 6, kind: input, shape index: {}]   ;;  %s643_s7 = inlined_call_operand.vmem [shape: bf16[16,128], index: 7, kind: output, shape index: {}]  }
   0x1   :  { %s20_s25 = sshll.u32 %s491_s24, 4  ;;  %s467_s28 = scalar_lea.hbm %s637_s1, 320  ;;  %s21_s25 = int_to_ptr.vmem [resolvable:$true] %s20_s25 }
   0x2   :  { %p468_p0 = scmp.ne.s32.totalorder %s637_s1, %s467_s28  ;;  %p471_p1 = scmp.lt.u32.totalorder %s467_s28, %s637_s1 }
   0x4   :  { %p473_p2 = pnand %p471_p1, %p468_p0 }
   0x6   :  { %476 = shalt.err (!%p473_p2)
}
   0x7   :  { %s477_s10 = scalar_lea.vmem %s21_s25, 320  ;;  %p482_p4 = scmp.lt.s32.totalorder %s21_s25, %s21_s25 }
   0x8   :  { %p478_p3 = scmp.ne.s32.totalorder %s21_s25, %s477_s10  ;;  %p483_p5 = scmp.lt.s32.totalorder %s477_s10, %s477_s10 }
   0xa   :  { %p484_p6 = por %p483_p5, %p482_p4 }
   0xc   :  { %p485_p7 = pnand %p484_p6, %p478_p3 }
   0xe   :  { %488 = shalt.err (!%p485_p7)
}
   0xf   :  { %s492_s11 = smov 64   ;;  %s493_s12 = smov 4  }
  0x10   :  { %26 = dma.hbm_to_vmem [thread:$0]  %s637_s1, 320, %s21_s25, [#allocation3], %s492_s11, %s492_s11, %s493_s12  }
  0x11   :  { %489 = dma.done.wait [#allocation3], 320  }
  0x12   :  { %490 = vsyncadd [#allocation3], 4294966976  ;;  %v494_v0 = vmov 0.0   ;;  %vm495_vm0 = vmmov 0   ;;  %v496_v1 = vmov 0   ;;  %v41_v2 = vld [vmem:[%s636_s0] sm:$0xff] }
  0x13   :  { %410 = vmatprep.subr.bf16.mxu0 %v494_v0  ;;  %412 = vmatprep.mubr.msk.bf16.mxu0 %vm495_vm0, %v494_v0  ;;  %v42_v3 = vld [vmem:[%s636_s0 + $0x8] sm:$0xff]  ;;  %v460_v5 = vld [vmem:[#allocation2] sm:$0xff]   ;;  %vm92_vm1 = vcmask 130048   ;;  %v51_v7 = vld [vmem:[%s638_s2 + $0x10] sm:$0xff]  ;;  %vm224_vm2 = vcmask 1043456   ;;  %vm214_vm3 = vcmask 326656  }
  0x14   :  { %458 = vset.pattern.permute.xlu0 %v496_v1  ;;  %459 = vset.pattern.permute.xlu1 %v496_v1  ;;  %v43_v4 = vpack.c.bf16 %v42_v3, %v41_v2  ;;  %v49_v6 = vld [vmem:[%s638_s2] sm:$0xff]  ;;  %v50_v8 = vld [vmem:[%s638_s2 + $0x8] sm:$0xff]  ;;  %v52_v9 = vld [vmem:[%s638_s2 + $0x18] sm:$0xff] }
  0x15   :  { %424 = vmatprep.subr.bf16.mxu1 %v494_v0  ;;  %430 = vmatprep.mubr.msk.bf16.mxu1 %vm495_vm0, %v494_v0  ;;  %v53_v10 = vld [vmem:[%s638_s2 + $0x20] sm:$0xff]  ;;  %v461_v12 = vld [vmem:[#allocation2 + $0x8] sm:$0xff]   ;;  %v173_v14 = vld [vmem:[%s640_s4 + $0x10] sm:$0xff] }
  0x16   :  { %411 = vmatpush3.bf16.msra.mxu0 %v43_v4  ;;  %56 = vperm.xlu0 %458, %v49_v6   ;;  %v171_v11 = vld [vmem:[%s640_s4] sm:$0xff]  ;;  %v172_v13 = vld [vmem:[%s640_s4 + $0x8] sm:$0xff]  ;;  %v174_v15 = vld [vmem:[%s640_s4 + $0x18] sm:$0xff] }
  0x17   :  { %66 = vperm.xlu1 %459, %v51_v7   ;;  %442 = vmatprep.subr.bf16.mxu0 %v494_v0  ;;  %v175_v16 = vld [vmem:[%s640_s4 + $0x20] sm:$0xff]  ;;  %v462_v17 = vld [vmem:[#allocation2 + $0x10] ss:$0 sps:$4 sm:$0xff]   ;;  %v295_v19 = vld [vmem:[%s642_s6 + $0x8] sm:$0xff] }
  0x18   :  { %v294_v18 = vld [vmem:[%s642_s6] sm:$0xff]  ;;  %v464_v52 = vld [vmem:[%s639_s3 + $0x8] sm:$0xff]   ;;  %v465_v53 = vld [vmem:[%s639_s3 + $0x10] ss:$0 sps:$4 sm:$0xff]  }
  0x19   :  { %413 = vmatmul.mubr.msk.bf16.vlgmr.msra.gmra.mrb[0].mxu0 %vm92_vm1, %v460_v5  ;;  %v463_v51 = vld [vmem:[%s639_s3] sm:$0xff]  }
  0x1a   :  { %416 = vmatprep.mubr.msk.bf16.mxu0 %vm495_vm0, %v494_v0  ;;  %61 = vperm.xlu0 %458, %v50_v8  }
  0x1b   :  { %71 = vperm.xlu1 %459, %v52_v9  }
  0x1e   :  { %76 = vperm.xlu0 %458, %v53_v10  }
  0x1f   :  { %178 = vperm.xlu1 %459, %v171_v11  }
  0x21   :  { %417 = vmatmul.mubr.msk.bf16.gmra.mrb[4].mxu0 %vm92_vm1, %v461_v12 }
  0x22   :  { %420 = vmatprep.mubr.msk.bf16.mxu0 %vm495_vm0, %v494_v0  ;;  %183 = vperm.xlu0 %458, %v172_v13  }
  0x23   :  { %188 = vperm.xlu1 %459, %v173_v14  }
  0x26   :  { %193 = vperm.xlu0 %458, %v174_v15  }
  0x27   :  { %198 = vperm.xlu1 %459, %v175_v16  }
  0x29   :  { %421 = vmatmul.mubr.msk.bf16.gmra.mrb[8].mxu0 %vm92_vm1, %v462_v17 }
  0x2a   :  { %448 = vmatprep.mubr.msk.bf16.mxu0 %vm495_vm0, %v494_v0  ;;  %298 = vperm.xlu0 %458, %v294_v18  }
  0x2b   :  { %303 = vperm.xlu1 %459, %v295_v19  }
  0x95   :  { %v57_v20 = vpop.permute.xlu0 %56 }
  0x96   :  { %v67_v28 = vpop.permute.xlu1 %66 }
  0x99   :  { %v62_v24 = vpop.permute.xlu0 %61 }
  0x9a   :  { %v72_v35 = vpop.permute.xlu1 %71 }
  0x9d   :  { %v77_v42 = vpop.permute.xlu0 %76 }
  0x9e   :  { %v179_v54 = vpop.permute.xlu1 %178 }
  0xa1   :  { %v184_v58 = vpop.permute.xlu0 %183 }
  0xa2   :  { %v189_v2 = vpop.permute.xlu1 %188 }
  0xa5   :  { %v194_v6 = vpop.permute.xlu0 %193 }
  0xa6   :  { %v199_v13 = vpop.permute.xlu1 %198 }
  0xec   :  { %v136_v21 = vpop.f32.mrb[0].mxu0 }
  0xed   :  { %v137_v22 = vadd.f32 %v136_v21, %v57_v20  ;;  %v414_v23 = vpop.f32.mrb[1].mxu0 }
  0xee   :  { %v139_v25 = vpop.f32.mrb[2].mxu0 }
  0xef   :  { %v140_v26 = vadd.f32 %v139_v25, %v62_v24  ;;  %v415_v27 = vpop.f32.mrb[3].mxu0  ;;  %v158_v29 = vmax.f32 %v137_v22, 0.0  ;;  %v466_v22 = vld [vmem:[%s641_s5] sm:$0xff]   ;;  %v299_v24 = vpop.permute.xlu0 %298 }
  0xf1   :  { %v159_v30 = vmax.f32 %v140_v26, 0.0  ;;  %v304_v26 = vpop.permute.xlu1 %303 }
  0xf3   :  { %v163_v31 = vpack.c.bf16 %v159_v30, %v158_v29 }
  0xf4   :  { %v144_v32 = vpop.f32.mrb[4].mxu0 }
  0xf5   :  { %v145_v33 = vadd.f32 %v144_v32, %v67_v28  ;;  %v418_v34 = vpop.f32.mrb[5].mxu0  ;;  %425 = vmatpush3.bf16.msra.mxu1 %v163_v31 }
  0xf6   :  { %v147_v36 = vpop.f32.mrb[6].mxu0  ;;  %426 = vmatprep.subr.bf16.mxu1 %v494_v0 }
  0xf7   :  { %v148_v37 = vadd.f32 %v147_v36, %v72_v35  ;;  %v419_v38 = vpop.f32.mrb[7].mxu0  ;;  %v160_v39 = vmax.f32 %v145_v33, 0.0 }
  0xf9   :  { %v161_v40 = vmax.f32 %v148_v37, 0.0 }
  0xfb   :  { %v164_v41 = vpack.c.bf16 %v161_v40, %v160_v39 }
  0xfc   :  { %v152_v43 = vpop.f32.mrb[8].mxu0 }
  0xfd   :  { %v153_v44 = vadd.f32 %v152_v43, %v77_v42  ;;  %v422_v45 = vpop.f32.mrb[9].mxu0  ;;  %427 = vmatpush3.bf16.msra.mxu1 %v164_v41 }
  0xfe   :  { %v155_v46 = vpop.f32.mrb[10].mxu0  ;;  %428 = vmatprep.subr.bf16.mxu1 %v494_v0 }
  0xff   :  { %v162_v47 = vmax.f32 %v153_v44, 0.0  ;;  %v423_v48 = vpop.f32.mrb[11].mxu0 }
 0x101   :  { %v165_v49 = vpack.c.bf16 %v162_v47, %v162_v47 }
 0x103   :  { %v226_v50 = vsel %vm224_vm2, %v165_v49, 0 }
 0x104   :  { %429 = vmatpush3.bf16.msra.mxu1 %v226_v50 }
 0x107   :  { %431 = vmatmul.mubr.msk.bf16.vlgmr.msra.gmra.mrb[0].mxu1 %vm214_vm3, %v463_v51 }
 0x108   :  { %434 = vmatprep.mubr.msk.bf16.mxu1 %vm495_vm0, %v494_v0 }
 0x10f   :  { %435 = vmatmul.mubr.msk.bf16.gmra.mrb[4].mxu1 %vm214_vm3, %v464_v52 }
 0x110   :  { %438 = vmatprep.mubr.msk.bf16.mxu1 %vm495_vm0, %v494_v0 }
 0x117   :  { %439 = vmatmul.mubr.msk.bf16.gmra.mrb[8].mxu1 %vm214_vm3, %v465_v53 }
 0x1da   :  { %v262_v55 = vpop.f32.mrb[0].mxu1 }
 0x1db   :  { %v263_v56 = vadd.f32 %v262_v55, %v179_v54  ;;  %v432_v57 = vpop.f32.mrb[1].mxu1 }
 0x1dc   :  { %v265_v59 = vpop.f32.mrb[2].mxu1 }
 0x1dd   :  { %v266_v60 = vadd.f32 %v265_v59, %v184_v58  ;;  %v433_v61 = vpop.f32.mrb[3].mxu1  ;;  %v284_v62 = vmax.f32 %v263_v56, 0.0 }
 0x1df   :  { %v285_v63 = vmax.f32 %v266_v60, 0.0 }
 0x1e1   :  { %v289_v1 = vpack.c.bf16 %v285_v63, %v284_v62 }
 0x1e2   :  { %v270_v3 = vpop.f32.mrb[4].mxu1 }
 0x1e3   :  { %v271_v4 = vadd.f32 %v270_v3, %v189_v2  ;;  %v436_v5 = vpop.f32.mrb[5].mxu1  ;;  %443 = vmatpush3.bf16.msra.mxu0 %v289_v1 }
 0x1e4   :  { %v273_v7 = vpop.f32.mrb[6].mxu1  ;;  %444 = vmatprep.subr.bf16.mxu0 %v494_v0 }
 0x1e5   :  { %v274_v8 = vadd.f32 %v273_v7, %v194_v6  ;;  %v437_v9 = vpop.f32.mrb[7].mxu1  ;;  %v286_v10 = vmax.f32 %v271_v4, 0.0 }
 0x1e7   :  { %v287_v11 = vmax.f32 %v274_v8, 0.0 }
 0x1e9   :  { %v290_v12 = vpack.c.bf16 %v287_v11, %v286_v10 }
 0x1ea   :  { %v278_v14 = vpop.f32.mrb[8].mxu1 }
 0x1eb   :  { %v279_v15 = vadd.f32 %v278_v14, %v199_v13  ;;  %v440_v16 = vpop.f32.mrb[9].mxu1  ;;  %445 = vmatpush3.bf16.msra.mxu0 %v290_v12 }
 0x1ec   :  { %v281_v17 = vpop.f32.mrb[10].mxu1  ;;  %446 = vmatprep.subr.bf16.mxu0 %v494_v0 }
 0x1ed   :  { %v288_v18 = vmax.f32 %v279_v15, 0.0  ;;  %v441_v19 = vpop.f32.mrb[11].mxu1 }
 0x1ef   :  { %v291_v20 = vpack.c.bf16 %v288_v18, %v288_v18 }
 0x1f1   :  { %v315_v21 = vsel %vm224_vm2, %v291_v20, 0 }
 0x1f2   :  { %447 = vmatpush3.bf16.msra.mxu0 %v315_v21 }
 0x1f5   :  { %449 = vmatmul.mubr.msk.bf16.vlgmr.msra.gmra.mrb[12].mxu0 %vm214_vm3, %v466_v22 }
 0x2c8   :  { %v351_v23 = vpop.f32.mrb[12].mxu0 }
 0x2c9   :  { %v450_v25 = vpop.f32.mrb[13].mxu0  ;;  %v352_v28 = vadd.f32 %v351_v23, %v299_v24 }
 0x2ca   :  { %v354_v27 = vpop.f32.mrb[14].mxu0 }
 0x2cb   :  { %v355_v29 = vadd.f32 %v354_v27, %v304_v26  ;;  %v451_v0 = vpop.f32.mrb[15].mxu0 }
 0x2cd   :  { %v394_v30 = vpack.c.bf16 %v355_v29, %v352_v28 }
 0x2cf   :  { %395 = vst [vmem:[%s643_s7] sm:$0xff] %v394_v30  }
 0x2d0   :  { %372 = vsyncpa [#allocation3], 1 }

</bundles_post_ra>
